<compile_context>
chip_gen: v7x
topology: tpu7x:2x2x1
jax: 0.10.0
libtpu: 0.0.40
codegen_flags: <defaults>
</compile_context>

<pallas_src>
from functools import partial

import jax
import jax.numpy as jnp
from jax.experimental import pallas as pl
from jax.experimental.pallas import tpu as pltpu

HIDDEN = 50        # logical hidden width (PyTorch module)
HIDDEN_PAD = 64    # padded hidden width (multiple of 8 sublanes, cheap on MXU)
NEG_INF = -1e30    # bias for padded action lanes -> exp() underflows to 0


def _round_up(x, m):
    return ((x + m - 1) // m) * m


def _policy_kernel(x_ref, w1_ref, b1_ref, w2_ref, b2_ref, w3_ref, b3_ref, out_ref):
    """Fused MLP forward for one batch tile: 3 matmuls + leaky_relu + softmax."""
    x = x_ref[...]

    # linear1 + leaky_relu(0.01)
    h1 = jnp.dot(x, w1_ref[...], preferred_element_type=jnp.float32) + b1_ref[...]
    h1 = jnp.where(h1 > 0, h1, 0.01 * h1)

    # linear2 + leaky_relu(0.01)
    h2 = jnp.dot(h1, w2_ref[...], preferred_element_type=jnp.float32) + b2_ref[...]
    h2 = jnp.where(h2 > 0, h2, 0.01 * h2)

    # head: logits stay 128-lane padded in VMEM; padded lanes carry -1e30 bias
    logits = jnp.dot(h2, w3_ref[...], preferred_element_type=jnp.float32) + b3_ref[...]

    # softmax over the (padded) action dimension; exact divide (kernel is
    # HBM-bound, so this costs nothing and keeps rows exactly normalized).
    m = jnp.max(logits, axis=-1, keepdims=True)
    e = jnp.exp(logits - m)
    s = jnp.sum(e, axis=-1, keepdims=True)
    probs = e / s

    # Store only the real action lanes (narrow, masked store is far cheaper
    # than writing the 128-lane padded slab back to HBM).
    out_ref[...] = probs[:, :out_ref.shape[-1]]


def prepare_params(params):
    """Pad weights/biases ONCE (outside the jitted forward path).

    * hidden 50 -> 64 with zeros (leaky_relu(0) == 0 -> padded units inert)
    * action dim -> round_up(num_actions, 128); padded lanes get a -1e30 bias
      so they contribute exp() == 0 to the softmax.
    Returns (padded_params, num_actions).
    """
    w1, b1, w2, b2, w3, b3 = params
    in_size = w1.shape[0]
    num_actions = w3.shape[1]
    act_pad = _round_up(num_actions, 128)

    w1p = jnp.zeros((in_size, HIDDEN_PAD), jnp.float32).at[:, :HIDDEN].set(w1)
    b1p = jnp.zeros((1, HIDDEN_PAD), jnp.float32).at[:, :HIDDEN].set(b1)
    w2p = jnp.zeros((HIDDEN_PAD, HIDDEN_PAD), jnp.float32).at[:HIDDEN, :HIDDEN].set(w2)
    b2p = jnp.zeros((1, HIDDEN_PAD), jnp.float32).at[:, :HIDDEN].set(b2)
    w3p = jnp.zeros((HIDDEN_PAD, act_pad), jnp.float32).at[:HIDDEN, :num_actions].set(w3)
    b3p = jnp.full((1, act_pad), NEG_INF, jnp.float32).at[:, :num_actions].set(b3)
    return (w1p, b1p, w2p, b2p, w3p, b3p), num_actions


@partial(jax.jit, static_argnames=("num_actions", "tile_b"))
def policy_network_forward(x, padded_params, *, num_actions, tile_b=1024):
    """x: (batch, input_size) f32 -> (batch, num_actions) f32 softmax probs."""
    batch, in_size = x.shape
    w1p, b1p, w2p, b2p, w3p, b3p = padded_params
    hidden_pad = w1p.shape[1]
    act_pad = w3p.shape[1]

    # Adaptive batch tile:
    #   * shrink for small batches (no 1024-row padding for batch=2)
    #   * keep >= 2 grid steps where possible so v7x uses both TensorCores
    tb = max(8, min(tile_b, _round_up(pl.cdiv(batch, 2), 8)))
    grid = (pl.cdiv(batch, tb),)
    rows = grid[0] * tb  # rows actually computed (last block may be ragged)

    flops = 2 * rows * (in_size * hidden_pad + hidden_pad * hidden_pad
                        + hidden_pad * act_pad)
    transcendentals = rows * act_pad  # exp per (padded) lane
    bytes_accessed = 4 * (rows * in_size + rows * num_actions
                          + in_size * hidden_pad + hidden_pad * hidden_pad
                          + hidden_pad * act_pad + 2 * hidden_pad + act_pad)

    const = lambda i: (0, 0)  # weights/biases resident in VMEM across grid steps
    out = pl.pallas_call(
        _policy_kernel,
        out_shape=jax.ShapeDtypeStruct((batch, num_actions), jnp.float32),
        grid=grid,
        in_specs=[
            pl.BlockSpec((tb, in_size), lambda i: (i, 0)),        # x tile
            pl.BlockSpec((in_size, hidden_pad), const),           # w1
            pl.BlockSpec((1, hidden_pad), const),                 # b1
            pl.BlockSpec((hidden_pad, hidden_pad), const),        # w2
            pl.BlockSpec((1, hidden_pad), const),                 # b2
            pl.BlockSpec((hidden_pad, act_pad), const),           # w3
            pl.BlockSpec((1, act_pad), const),                    # b3
        ],
        out_specs=pl.BlockSpec((tb, num_actions), lambda i: (i, 0)),
        compiler_params=pltpu.CompilerParams(
            dimension_semantics=("parallel",)),
        cost_estimate=pl.CostEstimate(
            flops=flops,
            transcendentals=transcendentals,
            bytes_accessed=bytes_accessed),
    )(x, w1p, b1p, w2p, b2p, w3p, b3p)
    return out


def init_params(key, input_size, num_actions, hidden=HIDDEN):
    """PyTorch-style nn.Linear init (uniform +/- 1/sqrt(fan_in)); weights (in, out)."""
    def linear(k, fan_in, fan_out):
        kw, kb = jax.random.split(k)
        bound = 1.0 / jnp.sqrt(jnp.float32(fan_in))
        w = jax.random.uniform(kw, (fan_in, fan_out), jnp.float32, -bound, bound)
        b = jax.random.uniform(kb, (1, fan_out), jnp.float32, -bound, bound)
        return w, b

    k1, k2, k3 = jax.random.split(key, 3)
    w1, b1 = linear(k1, input_size, hidden)
    w2, b2 = linear(k2, hidden, hidden)
    w3, b3 = linear(k3, hidden, num_actions)
    return (w1, b1, w2, b2, w3, b3)


def _reference_forward(x, params):
    """Pure-JAX reference (unpadded) for correctness check."""
    w1, b1, w2, b2, w3, b3 = params
    h1 = x @ w1 + b1
    h1 = jnp.where(h1 > 0, h1, 0.01 * h1)
    h2 = h1 @ w2 + b2
    h2 = jnp.where(h2 > 0, h2, 0.01 * h2)
    logits = h2 @ w3 + b3
    return jax.nn.softmax(logits, axis=-1)


if __name__ == "__main__":
    input_size = 16
    num_actions = 4
    batch = 2

    key = jax.random.PRNGKey(0)
    k_params, k_x = jax.random.split(key)
    params = init_params(k_params, input_size, num_actions)
    x = jax.random.normal(k_x, (batch, input_size), dtype=jnp.float32)

    # Pad/prepare weights once, outside the jitted forward path.
    padded_params, n_act = prepare_params(params)

    out = jax.block_until_ready(
        policy_network_forward(x, padded_params, num_actions=n_act))
    ref = jax.block_until_ready(_reference_forward(x, params))

    assert out.shape == (batch, num_actions)
    assert jnp.allclose(jnp.sum(out, axis=-1), 1.0, atol=1e-5)
    assert jnp.allclose(out, ref, atol=1e-5, rtol=1e-5)

    print("KERNEL_OK")
</pallas_src>

<mosaic_0001>
module attributes {stable_mosaic.version = 11 : i64} {
  func.func @_policy_kernel(%arg0: i32, %arg1: memref<8x16xf32, #tpu.memory_space<vmem>>, %arg2: memref<16x64xf32, #tpu.memory_space<vmem>>, %arg3: memref<1x64xf32, #tpu.memory_space<vmem>>, %arg4: memref<64x64xf32, #tpu.memory_space<vmem>>, %arg5: memref<1x64xf32, #tpu.memory_space<vmem>>, %arg6: memref<64x128xf32, #tpu.memory_space<vmem>>, %arg7: memref<1x128xf32, #tpu.memory_space<vmem>>, %arg8: memref<8x4xf32, #tpu.memory_space<vmem>>) attributes {dimension_semantics = [#tpu.dimension_semantics<parallel>], iteration_bounds = array<i64: 1>, scalar_prefetch = 0 : i64, scratch_operands = 0 : i64, tpu.core_type = #tpu.core_type<tc>, window_params = [{transform_indices = @transform_0, window_bounds = array<i64: 8, 16>}, {pipeline_mode = #tpu.pipeline_mode<synchronous>, transform_indices = @transform_1, window_bounds = array<i64: 16, 64>}, {pipeline_mode = #tpu.pipeline_mode<synchronous>, transform_indices = @transform_2, window_bounds = array<i64: 1, 64>}, {pipeline_mode = #tpu.pipeline_mode<synchronous>, transform_indices = @transform_3, window_bounds = array<i64: 64, 64>}, {pipeline_mode = #tpu.pipeline_mode<synchronous>, transform_indices = @transform_4, window_bounds = array<i64: 1, 64>}, {pipeline_mode = #tpu.pipeline_mode<synchronous>, transform_indices = @transform_5, window_bounds = array<i64: 64, 128>}, {pipeline_mode = #tpu.pipeline_mode<synchronous>, transform_indices = @transform_6, window_bounds = array<i64: 1, 128>}, {transform_indices = @transform_7, window_bounds = array<i64: 8, 4>}]} {
    %c0 = arith.constant 0 : index
    %c0_0 = arith.constant 0 : index
    %0 = vector.load %arg1[%c0, %c0_0] : memref<8x16xf32, #tpu.memory_space<vmem>>, vector<8x16xf32>
    %c0_1 = arith.constant 0 : index
    %c0_2 = arith.constant 0 : index
    %1 = vector.load %arg2[%c0_1, %c0_2] : memref<16x64xf32, #tpu.memory_space<vmem>>, vector<16x64xf32>
    %cst = arith.constant dense<0.000000e+00> : vector<8x64xf32>
    %2 = tpu.matmul %0, %1, %cst {dimension_numbers = #tpu.dot_dimension_numbers<[1], [0], [0], [1], [0, 0, 1, 1], [], []>} : vector<8x16xf32>, vector<16x64xf32>, vector<8x64xf32> -> vector<8x64xf32>
    %c0_3 = arith.constant 0 : index
    %c0_4 = arith.constant 0 : index
    %3 = vector.load %arg3[%c0_3, %c0_4] : memref<1x64xf32, #tpu.memory_space<vmem>>, vector<1x64xf32>
    %4 = vector.broadcast %3 : vector<1x64xf32> to vector<8x64xf32>
    %5 = arith.addf %2, %4 : vector<8x64xf32>
    %cst_5 = arith.constant 0.000000e+00 : f32
    %6 = vector.broadcast %cst_5 : f32 to vector<8x64xf32>
    %7 = arith.cmpf ogt, %5, %6 : vector<8x64xf32>
    %cst_6 = arith.constant 0.00999999977 : f32
    %8 = vector.broadcast %cst_6 : f32 to vector<8x64xf32>
    %9 = arith.mulf %8, %5 : vector<8x64xf32>
    %10 = arith.select %7, %5, %9 : vector<8x64xi1>, vector<8x64xf32>
    %c0_7 = arith.constant 0 : index
    %c0_8 = arith.constant 0 : index
    %11 = vector.load %arg4[%c0_7, %c0_8] : memref<64x64xf32, #tpu.memory_space<vmem>>, vector<64x64xf32>
    %cst_9 = arith.constant dense<0.000000e+00> : vector<8x64xf32>
    %12 = tpu.matmul %10, %11, %cst_9 {dimension_numbers = #tpu.dot_dimension_numbers<[1], [0], [0], [1], [0, 0, 1, 1], [], []>} : vector<8x64xf32>, vector<64x64xf32>, vector<8x64xf32> -> vector<8x64xf32>
    %c0_10 = arith.constant 0 : index
    %c0_11 = arith.constant 0 : index
    %13 = vector.load %arg5[%c0_10, %c0_11] : memref<1x64xf32, #tpu.memory_space<vmem>>, vector<1x64xf32>
    %14 = vector.broadcast %13 : vector<1x64xf32> to vector<8x64xf32>
    %15 = arith.addf %12, %14 : vector<8x64xf32>
    %cst_12 = arith.constant 0.000000e+00 : f32
    %16 = vector.broadcast %cst_12 : f32 to vector<8x64xf32>
    %17 = arith.cmpf ogt, %15, %16 : vector<8x64xf32>
    %cst_13 = arith.constant 0.00999999977 : f32
    %18 = vector.broadcast %cst_13 : f32 to vector<8x64xf32>
    %19 = arith.mulf %18, %15 : vector<8x64xf32>
    %20 = arith.select %17, %15, %19 : vector<8x64xi1>, vector<8x64xf32>
    %c0_14 = arith.constant 0 : index
    %c0_15 = arith.constant 0 : index
    %21 = vector.load %arg6[%c0_14, %c0_15] : memref<64x128xf32, #tpu.memory_space<vmem>>, vector<64x128xf32>
    %cst_16 = arith.constant dense<0.000000e+00> : vector<8x128xf32>
    %22 = tpu.matmul %20, %21, %cst_16 {dimension_numbers = #tpu.dot_dimension_numbers<[1], [0], [0], [1], [0, 0, 1, 1], [], []>} : vector<8x64xf32>, vector<64x128xf32>, vector<8x128xf32> -> vector<8x128xf32>
    %c0_17 = arith.constant 0 : index
    %c0_18 = arith.constant 0 : index
    %23 = vector.load %arg7[%c0_17, %c0_18] : memref<1x128xf32, #tpu.memory_space<vmem>>, vector<1x128xf32>
    %24 = vector.broadcast %23 : vector<1x128xf32> to vector<8x128xf32>
    %25 = arith.addf %22, %24 : vector<8x128xf32>
    %cst_19 = arith.constant dense<0xFF800000> : vector<8xf32>
    %26 = vector.multi_reduction <maximumf>, %25, %cst_19 [1] : vector<8x128xf32> to vector<8xf32>
    %27 = vector.shape_cast %26 : vector<8xf32> to vector<8x1xf32>
    %28 = vector.broadcast %27 : vector<8x1xf32> to vector<8x128xf32>
    %29 = arith.subf %25, %28 : vector<8x128xf32>
    %30 = math.exp %29 : vector<8x128xf32>
    %cst_20 = arith.constant dense<0.000000e+00> : vector<8xf32>
    %31 = vector.multi_reduction <add>, %30, %cst_20 [1] : vector<8x128xf32> to vector<8xf32>
    %32 = vector.shape_cast %31 : vector<8xf32> to vector<8x1xf32>
    %33 = vector.broadcast %32 : vector<8x1xf32> to vector<8x128xf32>
    %34 = arith.divf %30, %33 : vector<8x128xf32>
    %35 = vector.extract_strided_slice %34 {offsets = [0, 0], sizes = [8, 4], strides = [1, 1]} : vector<8x128xf32> to vector<8x4xf32>
    %c0_21 = arith.constant 0 : index
    %c0_22 = arith.constant 0 : index
    %36 = vector.load %arg8[%c0_21, %c0_22] : memref<8x4xf32, #tpu.memory_space<vmem>>, vector<8x4xf32>
    tpu.vector_store %arg8[%c0_21, %c0_22], %35 {strides = array<i32>} : memref<8x4xf32, #tpu.memory_space<vmem>>, vector<8x4xf32>,
    return
  }
  func.func @transform_0(%arg0: i32) -> (i32, i32) {
    %c0_i32 = arith.constant 0 : i32
    %c0_i32_0 = arith.constant 0 : i32
    return %arg0, %c0_i32 : i32, i32
  }
  func.func @transform_1(%arg0: i32) -> (i32, i32) {
    %c0_i32 = arith.constant 0 : i32
    %c0_i32_0 = arith.constant 0 : i32
    %c0_i32_1 = arith.constant 0 : i32
    return %c0_i32, %c0_i32_0 : i32, i32
  }
  func.func @transform_2(%arg0: i32) -> (i32, i32) {
    %c0_i32 = arith.constant 0 : i32
    %c0_i32_0 = arith.constant 0 : i32
    %c0_i32_1 = arith.constant 0 : i32
    return %c0_i32, %c0_i32_0 : i32, i32
  }
  func.func @transform_3(%arg0: i32) -> (i32, i32) {
    %c0_i32 = arith.constant 0 : i32
    %c0_i32_0 = arith.constant 0 : i32
    %c0_i32_1 = arith.constant 0 : i32
    return %c0_i32, %c0_i32_0 : i32, i32
  }
  func.func @transform_4(%arg0: i32) -> (i32, i32) {
    %c0_i32 = arith.constant 0 : i32
    %c0_i32_0 = arith.constant 0 : i32
    %c0_i32_1 = arith.constant 0 : i32
    return %c0_i32, %c0_i32_0 : i32, i32
  }
  func.func @transform_5(%arg0: i32) -> (i32, i32) {
    %c0_i32 = arith.constant 0 : i32
    %c0_i32_0 = arith.constant 0 : i32
    %c0_i32_1 = arith.constant 0 : i32
    return %c0_i32, %c0_i32_0 : i32, i32
  }
  func.func @transform_6(%arg0: i32) -> (i32, i32) {
    %c0_i32 = arith.constant 0 : i32
    %c0_i32_0 = arith.constant 0 : i32
    %c0_i32_1 = arith.constant 0 : i32
    return %c0_i32, %c0_i32_0 : i32, i32
  }
  func.func @transform_7(%arg0: i32) -> (i32, i32) {
    %c0_i32 = arith.constant 0 : i32
    %c0_i32_0 = arith.constant 0 : i32
    return %arg0, %c0_i32 : i32, i32
  }
}

</mosaic_0001>

<bundles_post_ra>
// kernel: policy_network_forward.1
= control target key start
LH: loop header
LB: loop body
LE: loop exit
PB: predicated region body
PF: predicated region fallthrough
CT: control target
= control target key end

     0   :  { %12 = vsyncpa [#allocation3], 0  ;;  %s758_s0 = inlined_call_operand.hbm [shape: f32[2,16], index: 0, kind: input, shape index: {}]   ;;  %s759_s1 = inlined_call_operand.hbm [shape: f32[16,64], index: 1, kind: input, shape index: {}]   ;;  %s760_s2 = inlined_call_operand.vmem [shape: f32[1,64], index: 2, kind: input, shape index: {}]   ;;  %s761_s3 = inlined_call_operand.hbm [shape: f32[64,64], index: 3, kind: input, shape index: {}]   ;;  %s762_s4 = inlined_call_operand.vmem [shape: f32[1,64], index: 4, kind: input, shape index: {}]   ;;  %s763_s5 = inlined_call_operand.hbm [shape: f32[64,128], index: 5, kind: input, shape index: {}]   ;;  %s764_s6 = inlined_call_operand.vmem [shape: f32[1,128], index: 6, kind: input, shape index: {}]   ;;  %s765_s7 = inlined_call_operand.hbm [shape: f32[2,4], index: 7, kind: output, shape index: {}]  }
   0x1   :  { %13 = vsyncpa [#allocation6], 0 }
   0x2   :  { %14 = vsyncpa [#allocation9], 0 }
   0x3   :  { %15 = vsyncpa [#allocation4], 0 }
   0x4   :  { %20 = vsyncadd [#allocation3], 96  ;;  %s612_s24 = smov [#allocation5]   ;;  %s494_s28 = scalar_lea.hbm %s759_s1, 256 }
   0x5   :  { %s33_s25 = sshll.u32 %s612_s24, 4  ;;  %p495_p0 = scmp.ne.s32.totalorder %s759_s1, %s494_s28  ;;  %s34_s25 = int_to_ptr.vmem [resolvable:$true] %s33_s25 }
   0x6   :  { %p498_p1 = scmp.lt.u32.totalorder %s494_s28, %s759_s1 }
   0x8   :  { %p500_p2 = pnand %p498_p1, %p495_p0 }
   0xa   :  { %503 = shalt.err (!%p500_p2)
}
   0xb   :  { %s504_s10 = scalar_lea.vmem %s34_s25, 256  ;;  %p509_p4 = scmp.lt.s32.totalorder %s34_s25, %s34_s25 }
   0xc   :  { %p505_p3 = scmp.ne.s32.totalorder %s34_s25, %s504_s10  ;;  %p510_p5 = scmp.lt.s32.totalorder %s504_s10, %s504_s10 }
   0xe   :  { %p511_p6 = por %p510_p5, %p509_p4 }
  0x10   :  { %p512_p7 = pnand %p511_p6, %p505_p3 }
  0x12   :  { %515 = shalt.err (!%p512_p7)
}
  0x13   :  { %s613_s11 = smov 128   ;;  %s614_s12 = smov 8  }
  0x14   :  { %39 = dma.hbm_to_vmem [thread:$0]  %s759_s1, 256, %s34_s25, [#allocation6], %s613_s11, %s613_s11, %s614_s12  }
  0x15   :  { %s615_s15 = smov [#allocation2]   ;;  %s516_s19 = scalar_lea.hbm %s758_s0, 32 }
  0x16   :  { %s21_s16 = sshll.u32 %s615_s15, 4  ;;  %p517_p8 = scmp.ne.s32.totalorder %s758_s0, %s516_s19  ;;  %s22_s16 = int_to_ptr.vmem [resolvable:$true] %s21_s16 }
  0x17   :  { %p520_p9 = scmp.lt.u32.totalorder %s516_s19, %s758_s0 }
  0x19   :  { %p522_p10 = pnand %p520_p9, %p517_p8 }
  0x1b   :  { %525 = shalt.err (!%p522_p10)
}
  0x1c   :  { %s526_s24 = scalar_lea.vmem %s22_s16, 32  ;;  %s530_s1 = scalar_lea.vmem %s22_s16, 128 }
  0x1d   :  { %p527_p11 = scmp.ne.s32.totalorder %s22_s16, %s526_s24  ;;  %p531_p12 = scmp.lt.s32.totalorder %s22_s16, %s22_s16 }
  0x1e   :  { %p532_p13 = scmp.lt.s32.totalorder %s530_s1, %s526_s24 }
  0x20   :  { %p533_p0 = por %p532_p13, %p531_p12 }
  0x22   :  { %p534_p1 = pnand %p533_p0, %p527_p11 }
  0x24   :  { %537 = shalt.err (!%p534_p1)
}
  0x25   :  { %s616_s25 = smov 32   ;;  %s617_s26 = smov 2  }
  0x26   :  { %27 = dma.hbm_to_vmem [thread:$0]  %s758_s0, 32, %s22_s16, [#allocation3], %s616_s25, %s616_s25, %s617_s26  }
  0x27   :  { %s618_s29 = smov [#allocation7]   ;;  %s619_s8 = smov [#allocation8]  }
  0x28   :  { %s47_s30 = sshll.u32 %s618_s29, 4  ;;  %s61_s9 = sshll.u32 %s619_s8, 4  ;;  %s48_s30 = int_to_ptr.vmem [resolvable:$true] %s47_s30  ;;  %s694_s9 = int_to_ptr.vmem [resolvable:$true] %s61_s9 }
  0x29   :  { %s538_s14 = scalar_lea.hbm %s761_s3, 1024 }
  0x2a   :  { %p539_p2 = scmp.ne.s32.totalorder %s761_s3, %s538_s14  ;;  %p542_p3 = scmp.lt.u32.totalorder %s538_s14, %s761_s3 }
  0x2c   :  { %p544_p4 = pnand %p542_p3, %p539_p2 }
  0x2e   :  { %547 = shalt.err (!%p544_p4)
}
  0x2f   :  { %s548_s0 = scalar_lea.vmem %s48_s30, 1024  ;;  %p553_p6 = scmp.lt.s32.totalorder %s48_s30, %s48_s30 }
  0x30   :  { %p549_p5 = scmp.ne.s32.totalorder %s48_s30, %s548_s0  ;;  %p554_p7 = scmp.lt.s32.totalorder %s548_s0, %s548_s0 }
  0x32   :  { %p555_p8 = por %p554_p7, %p553_p6 }
  0x34   :  { %p556_p9 = pnand %p555_p8, %p549_p5 }
  0x36   :  { %559 = shalt.err (!%p556_p9)
}
  0x37   :  { %53 = dma.hbm_to_vmem [thread:$0]  %s761_s3, 1024, %s48_s30, [#allocation6], %s613_s11, %s613_s11, %s614_s12  }
  0x38   :  { %s560_s23 = scalar_lea.hbm %s763_s5, 1024 }
  0x39   :  { %p561_p10 = scmp.ne.s32.totalorder %s763_s5, %s560_s23  ;;  %p564_p11 = scmp.lt.u32.totalorder %s560_s23, %s763_s5 }
  0x3b   :  { %p566_p12 = pnand %p564_p11, %p561_p10 }
  0x3d   :  { %569 = shalt.err (!%p566_p12)
}
  0x3e   :  { %s570_s29 = scalar_lea.vmem %s694_s9, 1024  ;;  %p575_p0 = scmp.lt.s32.totalorder %s694_s9, %s694_s9 }
  0x3f   :  { %p571_p13 = scmp.ne.s32.totalorder %s694_s9, %s570_s29  ;;  %p576_p1 = scmp.lt.s32.totalorder %s570_s29, %s570_s29 }
  0x41   :  { %p577_p2 = por %p576_p1, %p575_p0 }
  0x43   :  { %p578_p3 = pnand %p577_p2, %p571_p13 }
  0x45   :  { %581 = shalt.err (!%p578_p3)
}
  0x46   :  { %67 = dma.hbm_to_vmem [thread:$0]  %s763_s5, 1024, %s694_s9, [#allocation9], %s613_s11, %s613_s11, %s614_s12  }
  0x47   :  { %604 = dma.done.wait [#allocation3], 128  }
  0x48   :  { %605 = vsyncadd [#allocation3], 4294967168 }
  0x49   :  { %606 = dma.done.wait [#allocation6], 1280  }
  0x4a   :  { %607 = vsyncadd [#allocation6], 4294966016 }
  0x4b   :  { %608 = dma.done.wait [#allocation9], 1024  }
  0x4c   :  { %609 = vsyncadd [#allocation9], 4294966272  ;;  %v620_v0 = vmov 0.0|0.0   ;;  %vm621_vm0 = vmmov 0   ;;  %v622_v1 = vmov 0.0   ;;  %v83_v2 = vld [vmem:[#allocation5] sm:$0xff] }
  0x4d   :  { %451 = vmatprep.subr.bf16.mxu0 %v620_v0  ;;  %410 = vmatprep.mubr.msk.f32.mxu0 %vm621_vm0, %v622_v1  ;;  %v84_v3 = vld [vmem:[#allocation5 + $0x8] sm:$0xff]  ;;  %v169_v5 = vld [vmem:[#allocation7] sm:$0xff]  ;;  %v170_v6 = vld [vmem:[#allocation7 + $0x8] sm:$0xff]  ;;  %vm92_vm1 = vcmask 130048   ;;  %vm184_vm3 = vcmask 523264   ;;  %vm358_vm5 = vcmask 31744  }
  0x4e   :  { %454 = vmatprep.subr.bf16.mxu1 %v620_v0  ;;  %429 = vmatprep.mubr.msk.f32.mxu1 %vm621_vm0, %v622_v1  ;;  %v452_v4 = vpack.c.bf16 %v84_v3, %v83_v2  ;;  %v171_v7 = vld [vmem:[#allocation7 + $0x10] sm:$0xff]  ;;  %v455_v8 = vpack.c.bf16 %v170_v6, %v169_v5  ;;  %v172_v9 = vld [vmem:[#allocation7 + $0x18] sm:$0xff]  ;;  %v82_v10 = vld [vmem:[#allocation2] sm:$0xff] }
  0x4f   :  { %v458_v11 = vpack.c.bf16 %v172_v9, %v171_v7  ;;  %v173_v12 = vld [vmem:[#allocation7 + $0x20] sm:$0xff]  ;;  %v174_v13 = vld [vmem:[#allocation7 + $0x28] sm:$0xff]  ;;  %v175_v15 = vld [vmem:[#allocation7 + $0x30] sm:$0xff] }
  0x50   :  { %453 = vmatpush3.bf16.msra.mxu0 %v452_v4  ;;  %456 = vmatpush3.bf16.msra.mxu1 %v455_v8  ;;  %v461_v14 = vpack.c.bf16 %v174_v13, %v173_v12  ;;  %v176_v16 = vld [vmem:[#allocation7 + $0x38] sm:$0xff]  ;;  %v261_v18 = vld [vmem:[#allocation8] sm:$0xff]  ;;  %v262_v19 = vld [vmem:[#allocation8 + $0x8] sm:$0xff] }
  0x51   :  { %466 = vmatprep.subr.bf16.mxu0 %v620_v0  ;;  %457 = vmatprep.subr.bf16.mxu1 %v620_v0  ;;  %v464_v17 = vpack.c.bf16 %v176_v16, %v175_v15  ;;  %v263_v20 = vld [vmem:[#allocation8 + $0x10] sm:$0xff]  ;;  %v467_v21 = vpack.c.bf16 %v262_v19, %v261_v18  ;;  %v264_v22 = vld [vmem:[#allocation8 + $0x18] sm:$0xff]  ;;  %v265_v24 = vld [vmem:[#allocation8 + $0x20] sm:$0xff] }
  0x52   :  { %v470_v23 = vpack.c.bf16 %v264_v22, %v263_v20  ;;  %v266_v25 = vld [vmem:[#allocation8 + $0x28] sm:$0xff]  ;;  %v267_v33 = vld [vmem:[#allocation8 + $0x30] sm:$0xff]  ;;  %v268_v34 = vld [vmem:[#allocation8 + $0x38] sm:$0xff] }
  0x53   :  { %411 = vmatmul.mubr.msk.f32.vlgmr.msra.gmra.mrb[0].mxu0 %vm92_vm1, %v82_v10  ;;  %v473_v26 = vpack.c.bf16 %v266_v25, %v265_v24  ;;  %v379_v27 = vld [vmem:[%s760_s2] ss:$0 sm:$0xff]  ;;  %v476_v35 = vpack.c.bf16 %v268_v34, %v267_v33 }
  0x54   :  { %448 = vmatprep.mubr.msk.f32.mxu0 %vm621_vm0, %v622_v1  ;;  %459 = vmatpush3.bf16.msra.mxu1 %v458_v11  ;;  %v381_v36 = vld [vmem:[%s762_s4] ss:$0 sm:$0xff] }
  0x55   :  { %460 = vmatprep.subr.bf16.mxu1 %v620_v0  ;;  %468 = vmatpush3.bf16.msra.mxu0 %v467_v21  ;;  %v383_v42 = vld [vmem:[%s764_s6] ss:$0 sm:$0xff] }
  0x56   :  { %469 = vmatprep.subr.bf16.mxu0 %v620_v0 }
  0x58   :  { %462 = vmatpush3.bf16.msra.mxu1 %v461_v14 }
  0x59   :  { %463 = vmatprep.subr.bf16.mxu1 %v620_v0  ;;  %471 = vmatpush3.bf16.msra.mxu0 %v470_v23 }
  0x5a   :  { %472 = vmatprep.subr.bf16.mxu0 %v620_v0 }
  0x5c   :  { %465 = vmatpush3.bf16.msra.mxu1 %v464_v17 }
  0x5d   :  { %474 = vmatpush3.bf16.msra.mxu0 %v473_v26 }
  0x5e   :  { %475 = vmatprep.subr.bf16.mxu0 %v620_v0 }
  0x61   :  { %477 = vmatpush3.bf16.msra.mxu0 %v476_v35 }
 0x126   :  { %v162_v28 = vpop.f32.mrb[0].mxu0 }
 0x127   :  { %v163_v29 = vadd.f32 %v379_v27, %v162_v28  ;;  %v412_v30 = vpop.f32.mrb[1].mxu0 }
 0x129   :  { %vm166_vm2 = vcmp.gt.f32.partialorder %v163_v29, 0.0  ;;  %v167_v31 = vmul.f32 0.01, %v163_v29 }
 0x12b   :  { %v168_v32 = vsel %vm166_vm2, %v163_v29, %v167_v31 }
 0x12c   :  { %430 = vmatmul.mubr.msk.f32.vlgmr.msra.gmra.mrb[0].mxu1 %vm184_vm3, %v168_v32 }
 0x1ff   :  { %v254_v37 = vpop.f32.mrb[0].mxu1 }
 0x200   :  { %v255_v38 = vadd.f32 %v381_v36, %v254_v37  ;;  %v431_v39 = vpop.f32.mrb[1].mxu1 }
 0x202   :  { %vm258_vm4 = vcmp.gt.f32.partialorder %v255_v38, 0.0  ;;  %v259_v40 = vmul.f32 0.01, %v255_v38 }
 0x204   :  { %v260_v41 = vsel %vm258_vm4, %v255_v38, %v259_v40 }
 0x205   :  { %449 = vmatmul.mubr.msk.f32.vlgmr.msra.gmra.mrb[2].mxu0 %vm184_vm3, %v260_v41 }
 0x2d8   :  { %v345_v43 = vpop.f32.mrb[2].mxu0 }
 0x2d9   :  { %v346_v44 = vadd.f32 %v383_v42, %v345_v43  ;;  %v450_v45 = vpop.f32.mrb[3].mxu0 }
 0x2db   :  { %349 = vmax.xlane.f32.xlu0 %v346_v44 }
 0x368   :  { %v350_v46 = vpop.xlane.xlu0 %349 }
 0x369   :  { %v351_v47 = vsub.f32 %v346_v44, %v350_v46 }
 0x36b   :  { %v352_v48 = vmul.f32 1.442695, %v351_v47 }
 0x36d   :  { %490 = vpow2.f32 %v352_v48 }
 0x377   :  { %v491_v49 = vpop.eup %490 }
 0x378   :  { %354 = vadd.xlane.f32.xlu0 %v491_v49 }
 0x405   :  { %v355_v50 = vpop.xlane.xlu0 %354 }
 0x406   :  { %492 = vrcp.f32 %v355_v50 }
 0x410   :  { %v493_v51 = vpop.eup %492 }
 0x411   :  { %v357_v52 = vmul.f32 %v493_v51, %v491_v49 }
 0x413   :  { %359 = vst.msk [vmem:[#allocation10] sm:$0xff] %vm358_vm5, %v357_v52 }
 0x414   :  { %364 = vsyncadd [#allocation4], 96  ;;  %s623_s4 = smov [#allocation10]  }
 0x415   :  { %s365_s10 = sshll.u32 %s623_s4, 4  ;;  %s366_s10 = int_to_ptr.vmem [resolvable:$true] %s365_s10 }
 0x416   :  { %s582_s6 = scalar_lea.vmem %s366_s10, 32  ;;  %s586_s13 = scalar_lea.vmem %s366_s10, 128 }
 0x417   :  { %p583_p4 = scmp.ne.s32.totalorder %s366_s10, %s582_s6  ;;  %p587_p5 = scmp.lt.s32.totalorder %s366_s10, %s366_s10 }
 0x418   :  { %p588_p6 = scmp.lt.s32.totalorder %s586_s13, %s582_s6 }
 0x41a   :  { %p589_p7 = por %p588_p6, %p587_p5 }
 0x41c   :  { %p590_p8 = pnand %p589_p7, %p583_p4 }
 0x41e   :  { %593 = shalt.err (!%p590_p8)
}
 0x41f   :  { %s594_s17 = scalar_lea.hbm %s765_s7, 32 }
 0x420   :  { %p595_p9 = scmp.ne.s32.totalorder %s765_s7, %s594_s17  ;;  %p598_p10 = scmp.lt.u32.totalorder %s594_s17, %s765_s7 }
 0x422   :  { %p600_p11 = pnand %p598_p10, %p595_p9 }
 0x424   :  { %603 = shalt.err (!%p600_p11)
}
 0x425   :  { %371 = dma.vmem_to_hbm [thread:$0]  %s366_s10, 32, %s765_s7, [#allocation4], %s616_s25, %s616_s25, %s617_s26  }
 0x426   :  { %610 = dma.done.wait [#allocation4], 128  }
 0x427   :  { %611 = vsyncadd [#allocation4], 4294967168 }
 0x428   :  { %375 = vsyncpa [#allocation3], 1 }
 0x429   :  { %376 = vsyncpa [#allocation6], 1 }
 0x42a   :  { %377 = vsyncpa [#allocation9], 1 }
 0x42b   :  { %378 = vsyncpa [#allocation4], 1 }

</bundles_post_ra>
